<compile_context>
chip_gen: v7x
topology: tpu7x:2x2x1
jax: 0.10.0
libtpu: 0.0.40
codegen_flags: <defaults>
</compile_context>

<pallas_src>
import functools
import math

import jax
import jax.numpy as jnp
from jax.experimental import pallas as pl
from jax.experimental.pallas import tpu as pltpu


def _round_up(x, m):
    return ((x + m - 1) // m) * m


# ----------------------------------------------------------------------------
# Fused Pallas kernel: the whole SymmetricNet forward.
#   refs = (obs, W_all, b_all, out)
#   obs  : (TB, P)        padded observations  [c | n | l | r | 0...]
#   W_all: (L, P, P)      per-layer packed block weights (zero-padded)
#   b_all: (L, 1, P)      per-layer packed bias rows (zero-padded)
#   out  : (TB, P)        padded output        [c | n | l | r | 0...]
# ----------------------------------------------------------------------------
def fused_symnet_kernel(obs_ref, w_ref, b_ref, out_ref, *,
                        num_layers: int, hidden: int, tanh_finish: bool):
    x = obs_ref[...]

    # Hoisted activation mask: every intermediate activation has the same
    # (TB, P) shape, packed as [c | n | l | r | pad] with `hidden` cols each.
    # relu on c/l/r (and the zero pad), tanh on n.
    if num_layers > 1:
        col = jax.lax.broadcasted_iota(
            jnp.int32, (x.shape[0], w_ref.shape[-1]), 1)
        is_neg = jnp.logical_and(col >= hidden, col < 2 * hidden)

    for i in range(num_layers):
        if i != 0:
            x = jnp.where(is_neg, jnp.tanh(x), jnp.maximum(x, 0.0))
        # One lane-dense block matmul per layer (W already (in, out)).
        x = jnp.dot(x, w_ref[i], preferred_element_type=jnp.float32)
        x = x + b_ref[i]
    if tanh_finish:
        x = jnp.tanh(x)  # tanh(0)=0 keeps pad columns at zero
    out_ref[...] = x


def symmetric_net_forward(W_all, b_all, log_std_param, obs, *,
                          out_total, hidden, tanh_finish=True,
                          deterministic=False):
    """Full SymmetricNet forward as a single Pallas call."""
    L, P, _ = W_all.shape
    B, in_total = obs.shape

    # Pad batch to a multiple of 8 sublanes and features to P lanes.
    # Padded input columns hit zero rows of W (inert); padded batch rows are
    # sliced off after the call.
    B_pad = _round_up(max(B, 8), 8)
    obs_p = jnp.zeros((B_pad, P), jnp.float32).at[:B, :in_total].set(obs)

    # Batch tile: multiple of 8, small enough that 2 double-buffered (TB, P)
    # activation tiles + the resident (L, P, P) weights stay well under the
    # v7x 64 MiB / 32 MiB-scoped VMEM budget.
    TB = min(B_pad, 256)
    grid = (B_pad // TB,)

    kernel = functools.partial(
        fused_symnet_kernel,
        num_layers=L, hidden=hidden, tanh_finish=tanh_finish)

    cost = pl.CostEstimate(
        flops=2 * B_pad * L * P * P,
        transcendentals=B_pad * P * L,  # tanh in inter-layer act + tanh_finish
        bytes_accessed=4 * (obs_p.size + W_all.size + b_all.size + B_pad * P),
    )

    out_p = pl.pallas_call(
        kernel,
        out_shape=jax.ShapeDtypeStruct((B_pad, P), jnp.float32),
        grid=grid,
        in_specs=[
            pl.BlockSpec((TB, P), lambda i: (i, 0)),        # obs tile
            pl.BlockSpec((L, P, P), lambda i: (0, 0, 0)),   # resident weights
            pl.BlockSpec((L, 1, P), lambda i: (0, 0, 0)),   # resident biases
        ],
        out_specs=pl.BlockSpec((TB, P), lambda i: (i, 0)),
        compiler_params=pltpu.CompilerParams(
            dimension_semantics=("parallel",)),
        cost_estimate=cost,
    )(obs_p, W_all, b_all)

    # Slice the real rows/columns BEFORE broadcasting log_std.
    mean = out_p[:B, :out_total]
    if deterministic:
        return mean
    log_std = jnp.broadcast_to(log_std_param, mean.shape)
    return mean, log_std


# ----------------------------------------------------------------------------
# Parameter construction (mirrors SymmetricLayer.reset_parameters:
# xavier_uniform_ with gain=wmag, zero biases).
# ----------------------------------------------------------------------------
def xavier_uniform(key, shape, gain=1.0):
    fan_out, fan_in = shape  # torch Linear-style (out, in)
    bound = gain * math.sqrt(6.0 / (fan_in + fan_out))
    return jax.random.uniform(key, shape, jnp.float32, -bound, bound)


def init_symmetric_layer(key, in_const, in_neg, in_side,
                         out_const, out_neg, out_side, wmag=1.0):
    names_shapes = [
        ("c2s", (out_side, in_const)),
        ("n2s", (out_side, in_neg)),
        ("c2c", (out_const, in_const)),
        ("s2c", (out_const, in_side)),
        ("s1s", (out_side, in_side)),
        ("s2s", (out_side, in_side)),
        ("n2n", (out_neg, in_neg)),
        ("s2n", (out_neg, in_side)),
    ]
    keys = jax.random.split(key, len(names_shapes))
    params = {
        name: xavier_uniform(k, shape, gain=wmag)
        for k, (name, shape) in zip(keys, names_shapes)
    }
    params["sbias"] = jnp.zeros((out_side,), jnp.float32)
    params["cbias"] = jnp.zeros((out_const,), jnp.float32)
    return params


def pack_symmetric_layer(p, dims, P):
    """Fold the 8 weights + 2 biases into one zero-padded (P, P) W and a
    (1, P) bias row.

    Input rows are blocked [c | n | l | r | pad]; output cols [c | n | l | r | pad]:
        c_out = c@c2c.T + 0.5*l@s2c.T + 0.5*r@s2c.T + cbias
        n_out = n@n2n.T +     l@s2n.T -     r@s2n.T
        l_out = c@c2s.T + n@n2s.T + l@s1s.T + r@s2s.T + sbias
        r_out = c@c2s.T - n@n2s.T + l@s2s.T + r@s1s.T + sbias
    """
    in_const, in_neg, in_side, out_const, out_neg, out_side = dims

    ci, ni = 0, in_const
    li, ri = in_const + in_neg, in_const + in_neg + in_side
    co, no = 0, out_const
    lo, ro = out_const + out_neg, out_const + out_neg + out_side

    W = jnp.zeros((P, P), jnp.float32)

    def put(W, r0, rlen, c0, clen, block):
        return W.at[r0:r0 + rlen, c0:c0 + clen].set(block)

    # c row block
    W = put(W, ci, in_const, co, out_const, p["c2c"].T)
    W = put(W, ci, in_const, lo, out_side, p["c2s"].T)
    W = put(W, ci, in_const, ro, out_side, p["c2s"].T)
    # n row block
    W = put(W, ni, in_neg, no, out_neg, p["n2n"].T)
    W = put(W, ni, in_neg, lo, out_side, p["n2s"].T)
    W = put(W, ni, in_neg, ro, out_side, -p["n2s"].T)
    # l row block
    W = put(W, li, in_side, co, out_const, 0.5 * p["s2c"].T)
    W = put(W, li, in_side, no, out_neg, p["s2n"].T)
    W = put(W, li, in_side, lo, out_side, p["s1s"].T)
    W = put(W, li, in_side, ro, out_side, p["s2s"].T)
    # r row block
    W = put(W, ri, in_side, co, out_const, 0.5 * p["s2c"].T)
    W = put(W, ri, in_side, no, out_neg, -p["s2n"].T)
    W = put(W, ri, in_side, lo, out_side, p["s2s"].T)
    W = put(W, ri, in_side, ro, out_side, p["s1s"].T)

    bias = jnp.zeros((1, P), jnp.float32)
    bias = bias.at[0, co:co + out_const].set(p["cbias"])
    bias = bias.at[0, lo:lo + out_side].set(p["sbias"])
    bias = bias.at[0, ro:ro + out_side].set(p["sbias"])
    return W, bias


def init_symmetric_net(key, c_in, n_in, s_in, c_out, n_out, s_out,
                       num_layers=3, hidden_size=16, log_std=-1.0):
    raw_layers, dims_list = [], []
    last_c, last_n, last_s = c_in, n_in, s_in
    keys = jax.random.split(key, num_layers)
    for i in range(num_layers - 1):
        raw_layers.append(
            init_symmetric_layer(keys[i], last_c, last_n, last_s,
                                 hidden_size, hidden_size, hidden_size,
                                 wmag=1.0))
        dims_list.append((last_c, last_n, last_s,
                          hidden_size, hidden_size, hidden_size))
        last_c = last_n = last_s = hidden_size
    raw_layers.append(
        init_symmetric_layer(keys[-1], last_c, last_n, last_s,
                             c_out, n_out, s_out, wmag=0.01))
    dims_list.append((last_c, last_n, last_s, c_out, n_out, s_out))

    in_total = c_in + n_in + 2 * s_in
    out_total = c_out + n_out + 2 * s_out
    hid_total = 4 * hidden_size if num_layers > 1 else out_total
    # Single lane-dense padded width shared by every layer.
    P = _round_up(max(in_total, hid_total, out_total, 128), 128)

    packed = [pack_symmetric_layer(p, d, P)
              for p, d in zip(raw_layers, dims_list)]
    W_all = jnp.stack([W for W, _ in packed])      # (L, P, P)
    b_all = jnp.stack([b for _, b in packed])      # (L, 1, P)

    # varying_std=False default -> constant log_std vector (non-trainable)
    log_std_param = jnp.full((out_total,), log_std, jnp.float32)
    return raw_layers, W_all, b_all, log_std_param, out_total


# ----------------------------------------------------------------------------
# Pure-JAX reference (mirrors the PyTorch forward exactly) for verification.
# ----------------------------------------------------------------------------
def reference_forward(raw_layers, obs, c_in, n_in, s_in, tanh_finish):
    cs, ns, ss = c_in, n_in, s_in
    c = obs[..., 0:cs]
    n = obs[..., cs:cs + ns]
    l = obs[..., cs + ns:cs + ns + ss]
    r = obs[..., cs + ns + ss:cs + ns + 2 * ss]
    for i, p in enumerate(raw_layers):
        if i != 0:
            n = jnp.tanh(n)
            c = jnp.maximum(c, 0.0)
            r = jnp.maximum(r, 0.0)
            l = jnp.maximum(l, 0.0)
        c2s = c @ p["c2s"].T + p["sbias"]
        n2s = n @ p["n2s"].T
        s2c = ((l + r) / 2) @ p["s2c"].T + p["cbias"]
        s2n = (l - r) @ p["s2n"].T
        s2l = l @ p["s1s"].T + r @ p["s2s"].T
        s2r = r @ p["s1s"].T + l @ p["s2s"].T
        c, n, l, r = (s2c + c @ p["c2c"].T,
                      s2n + n @ p["n2n"].T,
                      c2s + n2s + s2l,
                      c2s - n2s + s2r)
    mean = jnp.concatenate([c, n, l, r], axis=-1)
    if tanh_finish:
        mean = jnp.tanh(mean)
    return mean


# ----------------------------------------------------------------------------
# main
# ----------------------------------------------------------------------------
if __name__ == "__main__":
    # Small, deterministic config: input_size = c_in + n_in + 2*s_in = 16.
    c_in, n_in, s_in = 3, 5, 4
    c_out, n_out, s_out = 2, 3, 2
    hidden_size = 16
    batch = 4

    key = jax.random.PRNGKey(0)
    k_params, k_obs = jax.random.split(key)

    raw_layers, W_all, b_all, log_std_param, out_total = init_symmetric_net(
        k_params, c_in, n_in, s_in, c_out, n_out, s_out,
        num_layers=3, hidden_size=hidden_size, log_std=-1.0,
    )

    obs = jax.random.normal(k_obs, (batch, c_in + n_in + 2 * s_in),
                            jnp.float32)

    mean, log_std = symmetric_net_forward(
        W_all, b_all, log_std_param, obs,
        out_total=out_total, hidden=hidden_size,
        tanh_finish=True, deterministic=False,
    )
    jax.block_until_ready((mean, log_std))

    assert mean.shape == (batch, out_total)
    assert log_std.shape == mean.shape

    # Verify against the unfused pure-JAX reference.
    mean_ref = reference_forward(raw_layers, obs, c_in, n_in, s_in,
                                 tanh_finish=True)
    assert jnp.allclose(mean, mean_ref, atol=1e-5, rtol=1e-5), (
        float(jnp.max(jnp.abs(mean - mean_ref))))

    print("KERNEL_OK")
</pallas_src>

<mosaic_0001>
module attributes {stable_mosaic.version = 11 : i64} {
  func.func @fused_symnet_kernel(%arg0: i32, %arg1: memref<8x128xf32, #tpu.memory_space<vmem>>, %arg2: memref<3x128x128xf32, #tpu.memory_space<vmem>>, %arg3: memref<3x1x128xf32, #tpu.memory_space<vmem>>, %arg4: memref<8x128xf32, #tpu.memory_space<vmem>>) attributes {dimension_semantics = [#tpu.dimension_semantics<parallel>], iteration_bounds = array<i64: 1>, scalar_prefetch = 0 : i64, scratch_operands = 0 : i64, tpu.core_type = #tpu.core_type<tc>, window_params = [{transform_indices = @transform_0, window_bounds = array<i64: 8, 128>}, {pipeline_mode = #tpu.pipeline_mode<synchronous>, transform_indices = @transform_1, window_bounds = array<i64: 3, 128, 128>}, {pipeline_mode = #tpu.pipeline_mode<synchronous>, transform_indices = @transform_2, window_bounds = array<i64: 3, 1, 128>}, {transform_indices = @transform_3, window_bounds = array<i64: 8, 128>}]} {
    %c0 = arith.constant 0 : index
    %c0_0 = arith.constant 0 : index
    %0 = vector.load %arg1[%c0, %c0_0] : memref<8x128xf32, #tpu.memory_space<vmem>>, vector<8x128xf32>
    %1 = tpu.iota {dimensions = array<i32: 1>} : vector<8x128xi32>
    %c16_i32 = arith.constant 16 : i32
    %2 = vector.broadcast %c16_i32 : i32 to vector<8x128xi32>
    %3 = arith.cmpi sge, %1, %2 : vector<8x128xi32>
    %c32_i32 = arith.constant 32 : i32
    %4 = vector.broadcast %c32_i32 : i32 to vector<8x128xi32>
    %5 = arith.cmpi slt, %1, %4 : vector<8x128xi32>
    %6 = arith.andi %3, %5 : vector<8x128xi1>
    %c0_1 = arith.constant 0 : index
    %c0_2 = arith.constant 0 : index
    %c0_3 = arith.constant 0 : index
    %7 = vector.load %arg2[%c0_1, %c0_2, %c0_3] : memref<3x128x128xf32, #tpu.memory_space<vmem>>, vector<1x128x128xf32>
    %8 = vector.shape_cast %7 : vector<1x128x128xf32> to vector<128x128xf32>
    %cst = arith.constant dense<0.000000e+00> : vector<8x128xf32>
    %9 = tpu.matmul %0, %8, %cst {dimension_numbers = #tpu.dot_dimension_numbers<[1], [0], [0], [1], [0, 0, 1, 1], [], []>} : vector<8x128xf32>, vector<128x128xf32>, vector<8x128xf32> -> vector<8x128xf32>
    %c0_4 = arith.constant 0 : index
    %c0_5 = arith.constant 0 : index
    %c0_6 = arith.constant 0 : index
    %10 = vector.load %arg3[%c0_4, %c0_5, %c0_6] : memref<3x1x128xf32, #tpu.memory_space<vmem>>, vector<1x1x128xf32>
    %11 = vector.shape_cast %10 : vector<1x1x128xf32> to vector<1x128xf32>
    %12 = vector.broadcast %11 : vector<1x128xf32> to vector<8x128xf32>
    %13 = arith.addf %9, %12 : vector<8x128xf32>
    %14 = math.tanh %13 : vector<8x128xf32>
    %cst_7 = arith.constant 0.000000e+00 : f32
    %15 = vector.broadcast %cst_7 : f32 to vector<8x128xf32>
    %16 = arith.maximumf %13, %15 : vector<8x128xf32>
    %17 = arith.select %6, %14, %16 : vector<8x128xi1>, vector<8x128xf32>
    %c1 = arith.constant 1 : index
    %c0_8 = arith.constant 0 : index
    %c0_9 = arith.constant 0 : index
    %18 = vector.load %arg2[%c1, %c0_8, %c0_9] : memref<3x128x128xf32, #tpu.memory_space<vmem>>, vector<1x128x128xf32>
    %19 = vector.shape_cast %18 : vector<1x128x128xf32> to vector<128x128xf32>
    %cst_10 = arith.constant dense<0.000000e+00> : vector<8x128xf32>
    %20 = tpu.matmul %17, %19, %cst_10 {dimension_numbers = #tpu.dot_dimension_numbers<[1], [0], [0], [1], [0, 0, 1, 1], [], []>} : vector<8x128xf32>, vector<128x128xf32>, vector<8x128xf32> -> vector<8x128xf32>
    %c1_11 = arith.constant 1 : index
    %c0_12 = arith.constant 0 : index
    %c0_13 = arith.constant 0 : index
    %21 = vector.load %arg3[%c1_11, %c0_12, %c0_13] : memref<3x1x128xf32, #tpu.memory_space<vmem>>, vector<1x1x128xf32>
    %22 = vector.shape_cast %21 : vector<1x1x128xf32> to vector<1x128xf32>
    %23 = vector.broadcast %22 : vector<1x128xf32> to vector<8x128xf32>
    %24 = arith.addf %20, %23 : vector<8x128xf32>
    %25 = math.tanh %24 : vector<8x128xf32>
    %cst_14 = arith.constant 0.000000e+00 : f32
    %26 = vector.broadcast %cst_14 : f32 to vector<8x128xf32>
    %27 = arith.maximumf %24, %26 : vector<8x128xf32>
    %28 = arith.select %6, %25, %27 : vector<8x128xi1>, vector<8x128xf32>
    %c2 = arith.constant 2 : index
    %c0_15 = arith.constant 0 : index
    %c0_16 = arith.constant 0 : index
    %29 = vector.load %arg2[%c2, %c0_15, %c0_16] : memref<3x128x128xf32, #tpu.memory_space<vmem>>, vector<1x128x128xf32>
    %30 = vector.shape_cast %29 : vector<1x128x128xf32> to vector<128x128xf32>
    %cst_17 = arith.constant dense<0.000000e+00> : vector<8x128xf32>
    %31 = tpu.matmul %28, %30, %cst_17 {dimension_numbers = #tpu.dot_dimension_numbers<[1], [0], [0], [1], [0, 0, 1, 1], [], []>} : vector<8x128xf32>, vector<128x128xf32>, vector<8x128xf32> -> vector<8x128xf32>
    %c2_18 = arith.constant 2 : index
    %c0_19 = arith.constant 0 : index
    %c0_20 = arith.constant 0 : index
    %32 = vector.load %arg3[%c2_18, %c0_19, %c0_20] : memref<3x1x128xf32, #tpu.memory_space<vmem>>, vector<1x1x128xf32>
    %33 = vector.shape_cast %32 : vector<1x1x128xf32> to vector<1x128xf32>
    %34 = vector.broadcast %33 : vector<1x128xf32> to vector<8x128xf32>
    %35 = arith.addf %31, %34 : vector<8x128xf32>
    %36 = math.tanh %35 : vector<8x128xf32>
    %c0_21 = arith.constant 0 : index
    %c0_22 = arith.constant 0 : index
    %37 = vector.load %arg4[%c0_21, %c0_22] : memref<8x128xf32, #tpu.memory_space<vmem>>, vector<8x128xf32>
    tpu.vector_store %arg4[%c0_21, %c0_22], %36 {strides = array<i32>} : memref<8x128xf32, #tpu.memory_space<vmem>>, vector<8x128xf32>,
    return
  }
  func.func @transform_0(%arg0: i32) -> (i32, i32) {
    %c0_i32 = arith.constant 0 : i32
    %c0_i32_0 = arith.constant 0 : i32
    return %arg0, %c0_i32 : i32, i32
  }
  func.func @transform_1(%arg0: i32) -> (i32, i32, i32) {
    %c0_i32 = arith.constant 0 : i32
    %c0_i32_0 = arith.constant 0 : i32
    %c0_i32_1 = arith.constant 0 : i32
    %c0_i32_2 = arith.constant 0 : i32
    return %c0_i32, %c0_i32_0, %c0_i32_1 : i32, i32, i32
  }
  func.func @transform_2(%arg0: i32) -> (i32, i32, i32) {
    %c0_i32 = arith.constant 0 : i32
    %c0_i32_0 = arith.constant 0 : i32
    %c0_i32_1 = arith.constant 0 : i32
    %c0_i32_2 = arith.constant 0 : i32
    return %c0_i32, %c0_i32_0, %c0_i32_1 : i32, i32, i32
  }
  func.func @transform_3(%arg0: i32) -> (i32, i32) {
    %c0_i32 = arith.constant 0 : i32
    %c0_i32_0 = arith.constant 0 : i32
    return %arg0, %c0_i32 : i32, i32
  }
}

</mosaic_0001>

<bundles_post_ra>
// kernel: tpu_custom_call.1
= control target key start
LH: loop header
LB: loop body
LE: loop exit
PB: predicated region body
PF: predicated region fallthrough
CT: control target
= control target key end

     0   :  { %8 = vsyncpa [#allocation3], 0  ;;  %s791_s0 = inlined_call_operand.hbm [shape: f32[8,128], index: 0, kind: input, shape index: {}]   ;;  %s792_s1 = inlined_call_operand.hbm [shape: f32[3,128,128], index: 1, kind: input, shape index: {}]   ;;  %s793_s2 = inlined_call_operand.vmem [shape: f32[3,1,128], index: 2, kind: input, shape index: {}]   ;;  %s794_s3 = inlined_call_operand.hbm [shape: f32[8,128], index: 3, kind: output, shape index: {}]  }
   0x1   :  { %9 = vsyncpa [#allocation6], 0 }
   0x2   :  { %10 = vsyncpa [#allocation4], 0  ;;  %s673_s12 = smov [#allocation2]   ;;  %s674_s14 = smov [#allocation5]  }
   0x3   :  { %s17_s13 = sshll.u32 %s673_s12, 4  ;;  %s26_s15 = sshll.u32 %s674_s14, 4  ;;  %s18_s13 = int_to_ptr.vmem [resolvable:$true] %s17_s13  ;;  %s701_s15 = int_to_ptr.vmem [resolvable:$true] %s26_s15 }
   0x4   :  { %s601_s18 = scalar_lea.hbm %s791_s0, 128 }
   0x5   :  { %p602_p0 = scmp.ne.s32.totalorder %s791_s0, %s601_s18  ;;  %p605_p1 = scmp.lt.u32.totalorder %s601_s18, %s791_s0 }
   0x7   :  { %p607_p2 = pnand %p605_p1, %p602_p0 }
   0x9   :  { %610 = shalt.err (!%p607_p2)
}
   0xa   :  { %s611_s23 = scalar_lea.vmem %s18_s13, 128  ;;  %p616_p4 = scmp.lt.s32.totalorder %s18_s13, %s18_s13 }
   0xb   :  { %p612_p3 = scmp.ne.s32.totalorder %s18_s13, %s611_s23  ;;  %p617_p5 = scmp.lt.s32.totalorder %s611_s23, %s611_s23 }
   0xd   :  { %p618_p6 = por %p617_p5, %p616_p4 }
   0xf   :  { %p619_p7 = pnand %p618_p6, %p612_p3 }
  0x11   :  { %622 = shalt.err (!%p619_p7)
}
  0x12   :  { %20 = dma.hbm_to_vmem [thread:$0]  %s791_s0, 128, %s18_s13, [#allocation3]  }
  0x13   :  { %s623_s28 = scalar_lea.hbm %s792_s1, 6144 }
  0x14   :  { %p624_p8 = scmp.ne.s32.totalorder %s792_s1, %s623_s28  ;;  %p627_p9 = scmp.lt.u32.totalorder %s623_s28, %s792_s1 }
  0x16   :  { %p629_p10 = pnand %p627_p9, %p624_p8 }
  0x18   :  { %632 = shalt.err (!%p629_p10)
}
  0x19   :  { %s633_s6 = scalar_lea.vmem %s701_s15, 6144  ;;  %p638_p12 = scmp.lt.s32.totalorder %s701_s15, %s701_s15 }
  0x1a   :  { %p634_p11 = scmp.ne.s32.totalorder %s701_s15, %s633_s6  ;;  %p639_p13 = scmp.lt.s32.totalorder %s633_s6, %s633_s6 }
  0x1c   :  { %p640_p0 = por %p639_p13, %p638_p12 }
  0x1e   :  { %p641_p1 = pnand %p640_p0, %p634_p11 }
  0x20   :  { %644 = shalt.err (!%p641_p1)
}
  0x21   :  { %s675_s0 = smov 128   ;;  %s676_s7 = smov 8  }
  0x22   :  { %32 = dma.hbm_to_vmem [thread:$0]  %s792_s1, 6144, %s701_s15, [#allocation6], %s675_s0, %s675_s0, %s676_s7  }
  0x23   :  { %667 = dma.done.wait [#allocation3], 128  }
  0x24   :  { %668 = vsyncadd [#allocation3], 4294967168 }
  0x25   :  { %669 = dma.done.wait [#allocation6], 6144  }
  0x26   :  { %670 = vsyncadd [#allocation6], 4294961152  ;;  %v677_v0 = vmov 0.0|0.0   ;;  %vm678_vm0 = vmmov 0   ;;  %v679_v1 = vmov 0.0   ;;  %v47_v2 = vld [vmem:[#allocation5] sm:$0xff] }
  0x27   :  { %515 = vmatprep.subr.bf16.mxu0 %v677_v0  ;;  %442 = vmatprep.mubr.msk.f32.mxu0 %vm678_vm0, %v679_v1  ;;  %v48_v3 = vld [vmem:[#allocation5 + $0x8] sm:$0xff]  ;;  %v49_v4 = vld [vmem:[#allocation5 + $0x10] sm:$0xff]  ;;  %v50_v6 = vld [vmem:[#allocation5 + $0x18] sm:$0xff]  ;;  %s680_s15 = smov [#allocation7]  }
  0x28   :  { %539 = vmatprep.subr.bf16.mxu1 %v677_v0  ;;  %477 = vmatprep.mubr.msk.f32.mxu1 %vm678_vm0, %v679_v1  ;;  %v516_v5 = vpack.c.bf16 %v48_v3, %v47_v2  ;;  %v519_v7 = vpack.c.bf16 %v50_v6, %v49_v4  ;;  %v51_v8 = vld [vmem:[#allocation5 + $0x20] sm:$0xff]  ;;  %v52_v9 = vld [vmem:[#allocation5 + $0x28] sm:$0xff]  ;;  %v146_v12 = vld [vmem:[#allocation5 + $0x90] sm:$0xff]  ;;  %v42_v2 = vlaneseq  ;;  %s344_s16 = sshll.u32 %s680_s15, 4  ;;  %s345_s16 = int_to_ptr.vmem [resolvable:$true] %s344_s16 }
  0x29   :  { %v144_v10 = vld [vmem:[#allocation5 + $0x80] sm:$0xff]  ;;  %v145_v11 = vld [vmem:[#allocation5 + $0x88] sm:$0xff]  ;;  %v147_v13 = vld [vmem:[#allocation5 + $0x98] sm:$0xff]  ;;  %v522_v14 = vpack.c.bf16 %v52_v9, %v51_v8  ;;  %s645_s17 = scalar_lea.vmem %s345_s16, 128  ;;  %p650_p3 = scmp.lt.s32.totalorder %s345_s16, %s345_s16 }
  0x2a   :  { %517 = vmatpush3.bf16.msra.mxu0 %v516_v5  ;;  %v540_v15 = vpack.c.bf16 %v145_v11, %v144_v10  ;;  %v53_v16 = vld [vmem:[#allocation5 + $0x30] sm:$0xff]  ;;  %v54_v17 = vld [vmem:[#allocation5 + $0x38] sm:$0xff]  ;;  %v543_v18 = vpack.c.bf16 %v147_v13, %v146_v12  ;;  %v148_v19 = vld [vmem:[#allocation5 + $0xa0] sm:$0xff]  ;;  %v43_v5 = vand.u32 127, %v42_v2  ;;  %p646_p2 = scmp.ne.s32.totalorder %s345_s16, %s645_s17  ;;  %p651_p4 = scmp.lt.s32.totalorder %s645_s17, %s645_s17 }
  0x2b   :  { %518 = vmatprep.subr.bf16.mxu0 %v677_v0  ;;  %v149_v20 = vld [vmem:[#allocation5 + $0xa8] sm:$0xff]  ;;  %v525_v21 = vpack.c.bf16 %v54_v17, %v53_v16  ;;  %v55_v22 = vld [vmem:[#allocation5 + $0x40] sm:$0xff]  ;;  %v150_v25 = vld [vmem:[#allocation5 + $0xb0] sm:$0xff] }
  0x2c   :  { %541 = vmatpush3.bf16.msra.mxu1 %v540_v15  ;;  %v56_v23 = vld [vmem:[#allocation5 + $0x48] sm:$0xff]  ;;  %v546_v24 = vpack.c.bf16 %v149_v20, %v148_v19  ;;  %v151_v26 = vld [vmem:[#allocation5 + $0xb8] sm:$0xff]  ;;  %v57_v28 = vld [vmem:[#allocation5 + $0x50] sm:$0xff]  ;;  %vm44_vm1 = vcmp.ge.s32.totalorder %v43_v5, 16  ;;  %vm45_vm2 = vcmp.lt.s32.totalorder %v43_v5, 32  ;;  %p652_p5 = por %p651_p4, %p650_p3 }
  0x2d   :  { %542 = vmatprep.subr.bf16.mxu1 %v677_v0  ;;  %v528_v27 = vpack.c.bf16 %v56_v23, %v55_v22  ;;  %v58_v29 = vld [vmem:[#allocation5 + $0x58] sm:$0xff]  ;;  %v549_v30 = vpack.c.bf16 %v151_v26, %v150_v25  ;;  %v59_v32 = vld [vmem:[#allocation5 + $0x60] sm:$0xff]  ;;  %v60_v33 = vld [vmem:[#allocation5 + $0x68] sm:$0xff] }
  0x2e   :  { %520 = vmatpush3.bf16.msra.mxu0 %v519_v7  ;;  %v531_v31 = vpack.c.bf16 %v58_v29, %v57_v28  ;;  %v534_v34 = vpack.c.bf16 %v60_v33, %v59_v32  ;;  %v61_v35 = vld [vmem:[#allocation5 + $0x70] sm:$0xff]  ;;  %v62_v36 = vld [vmem:[#allocation5 + $0x78] sm:$0xff]  ;;  %v152_v39 = vld [vmem:[#allocation5 + $0xc0] sm:$0xff]  ;;  %p653_p6 = pnand %p652_p5, %p646_p2 }
  0x2f   :  { %521 = vmatprep.subr.bf16.mxu0 %v677_v0  ;;  %v537_v37 = vpack.c.bf16 %v62_v36, %v61_v35  ;;  %v41_v38 = vld [vmem:[#allocation2] sm:$0xff]  ;;  %v153_v40 = vld [vmem:[#allocation5 + $0xc8] sm:$0xff]  ;;  %v154_v42 = vld [vmem:[#allocation5 + $0xd0] sm:$0xff] }
  0x30   :  { %544 = vmatpush3.bf16.msra.mxu1 %v543_v18  ;;  %v552_v41 = vpack.c.bf16 %v153_v40, %v152_v39  ;;  %v155_v43 = vld [vmem:[#allocation5 + $0xd8] sm:$0xff]  ;;  %v156_v45 = vld [vmem:[#allocation5 + $0xe0] sm:$0xff]  ;;  %v157_v46 = vld [vmem:[#allocation5 + $0xe8] sm:$0xff] }
  0x31   :  { %545 = vmatprep.subr.bf16.mxu1 %v677_v0  ;;  %v555_v44 = vpack.c.bf16 %v155_v43, %v154_v42  ;;  %v558_v47 = vpack.c.bf16 %v157_v46, %v156_v45  ;;  %v158_v48 = vld [vmem:[#allocation5 + $0xf0] sm:$0xff]  ;;  %v159_v49 = vld [vmem:[#allocation5 + $0xf8] sm:$0xff]  ;;  %v242_v51 = vld [vmem:[#allocation5 + $0x100] sm:$0xff] }
  0x32   :  { %523 = vmatpush3.bf16.msra.mxu0 %v522_v14  ;;  %v561_v50 = vpack.c.bf16 %v159_v49, %v158_v48  ;;  %v243_v52 = vld [vmem:[#allocation5 + $0x108] sm:$0xff]  ;;  %v244_v53 = vld [vmem:[#allocation5 + $0x110] sm:$0xff]  ;;  %v245_v55 = vld [vmem:[#allocation5 + $0x118] sm:$0xff] }
  0x33   :  { %524 = vmatprep.subr.bf16.mxu0 %v677_v0  ;;  %v564_v54 = vpack.c.bf16 %v243_v52, %v242_v51  ;;  %v567_v56 = vpack.c.bf16 %v245_v55, %v244_v53  ;;  %v246_v57 = vld [vmem:[#allocation5 + $0x120] sm:$0xff]  ;;  %v247_v58 = vld [vmem:[#allocation5 + $0x128] sm:$0xff]  ;;  %v248_v60 = vld [vmem:[#allocation5 + $0x130] sm:$0xff] }
  0x34   :  { %547 = vmatpush3.bf16.msra.mxu1 %v546_v24  ;;  %v570_v59 = vpack.c.bf16 %v247_v58, %v246_v57  ;;  %v249_v61 = vld [vmem:[#allocation5 + $0x138] sm:$0xff]  ;;  %vm762_vm3 = vmand %vm44_vm1, %vm45_vm2  ;;  %v250_v10 = vld [vmem:[#allocation5 + $0x140] sm:$0xff] }
  0x35   :  { %548 = vmatprep.subr.bf16.mxu1 %v677_v0  ;;  %v573_v62 = vpack.c.bf16 %v249_v61, %v248_v60  ;;  %v354_v63 = vld [vmem:[%s793_s2] ss:$0 sm:$0xff]  ;;  %v251_v11 = vld [vmem:[#allocation5 + $0x148] sm:$0xff]  ;;  %v252_v13 = vld [vmem:[#allocation5 + $0x150] sm:$0xff] }
  0x36   :  { %526 = vmatpush3.bf16.msra.mxu0 %v525_v21  ;;  %v576_v12 = vpack.c.bf16 %v251_v11, %v250_v10  ;;  %v253_v14 = vld [vmem:[#allocation5 + $0x158] sm:$0xff]  ;;  %v254_v16 = vld [vmem:[#allocation5 + $0x160] sm:$0xff]  ;;  %v255_v17 = vld [vmem:[#allocation5 + $0x168] sm:$0xff] }
  0x37   :  { %527 = vmatprep.subr.bf16.mxu0 %v677_v0  ;;  %v579_v15 = vpack.c.bf16 %v253_v14, %v252_v13  ;;  %v582_v18 = vpack.c.bf16 %v255_v17, %v254_v16  ;;  %v256_v19 = vld [vmem:[#allocation5 + $0x170] sm:$0xff]  ;;  %v257_v20 = vld [vmem:[#allocation5 + $0x178] sm:$0xff] }
  0x38   :  { %550 = vmatpush3.bf16.msra.mxu1 %v549_v30  ;;  %v585_v21 = vpack.c.bf16 %v257_v20, %v256_v19  ;;  %v356_v22 = vld [vmem:[%s793_s2 + $0x1] ss:$0 sm:$0xff]  ;;  %v358_v29 = vld [vmem:[%s793_s2 + $0x2] ss:$0 sm:$0xff] }
  0x39   :  { %551 = vmatprep.subr.bf16.mxu1 %v677_v0 }
  0x3a   :  { %529 = vmatpush3.bf16.msra.mxu0 %v528_v27 }
  0x3b   :  { %530 = vmatprep.subr.bf16.mxu0 %v677_v0 }
  0x3c   :  { %553 = vmatpush3.bf16.msra.mxu1 %v552_v41 }
  0x3d   :  { %554 = vmatprep.subr.bf16.mxu1 %v677_v0 }
  0x3e   :  { %532 = vmatpush3.bf16.msra.mxu0 %v531_v31 }
  0x3f   :  { %533 = vmatprep.subr.bf16.mxu0 %v677_v0 }
  0x40   :  { %556 = vmatpush3.bf16.msra.mxu1 %v555_v44 }
  0x41   :  { %557 = vmatprep.subr.bf16.mxu1 %v677_v0 }
  0x42   :  { %535 = vmatpush3.bf16.msra.mxu0 %v534_v34 }
  0x43   :  { %536 = vmatprep.subr.bf16.mxu0 %v677_v0 }
  0x44   :  { %559 = vmatpush3.bf16.msra.mxu1 %v558_v47 }
  0x45   :  { %560 = vmatprep.subr.bf16.mxu1 %v677_v0 }
  0x46   :  { %538 = vmatpush3.bf16.msra.mxu0 %v537_v37 }
  0x47   :  { %563 = vmatprep.subr.bf16.mxu0 %v677_v0 }
  0x48   :  { %562 = vmatpush3.bf16.msra.mxu1 %v561_v50 }
  0x49   :  { %443 = vmatmul.mubr.f32.vlgmr.msra.gmra.mrb[0].mxu0 %v41_v38 }
  0x4a   :  { %512 = vmatprep.mubr.msk.f32.mxu0 %vm678_vm0, %v679_v1  ;;  %565 = vmatpush3.bf16.msra.mxu0 %v564_v54 }
  0x4b   :  { %566 = vmatprep.subr.bf16.mxu0 %v677_v0 }
  0x4e   :  { %568 = vmatpush3.bf16.msra.mxu0 %v567_v56 }
  0x4f   :  { %569 = vmatprep.subr.bf16.mxu0 %v677_v0 }
  0x52   :  { %571 = vmatpush3.bf16.msra.mxu0 %v570_v59 }
  0x53   :  { %572 = vmatprep.subr.bf16.mxu0 %v677_v0 }
  0x56   :  { %574 = vmatpush3.bf16.msra.mxu0 %v573_v62 }
  0x57   :  { %575 = vmatprep.subr.bf16.mxu0 %v677_v0 }
  0x5a   :  { %577 = vmatpush3.bf16.msra.mxu0 %v576_v12 }
  0x5b   :  { %578 = vmatprep.subr.bf16.mxu0 %v677_v0 }
  0x5e   :  { %580 = vmatpush3.bf16.msra.mxu0 %v579_v15 }
  0x5f   :  { %581 = vmatprep.subr.bf16.mxu0 %v677_v0 }
  0x62   :  { %583 = vmatpush3.bf16.msra.mxu0 %v582_v18 }
  0x63   :  { %584 = vmatprep.subr.bf16.mxu0 %v677_v0 }
  0x66   :  { %586 = vmatpush3.bf16.msra.mxu0 %v585_v21 }
 0x11c   :  { %v136_v1 = vpop.f32.mrb[0].mxu0 }
 0x11d   :  { %v137_v3 = vadd.f32 %v354_v63, %v136_v1  ;;  %v444_v4 = vpop.f32.mrb[1].mxu0 }
 0x11f   :  { %595 = vtanh.f32 %v137_v3  ;;  %v141_v7 = vmax.f32 %v137_v3, 0.0 }
 0x129   :  { %v596_v8 = vpop.eup %595 }
 0x12a   :  { %v142_v9 = vsel %vm762_vm3, %v596_v8, %v141_v7 }
 0x12b   :  { %478 = vmatmul.mubr.f32.vlgmr.msra.gmra.mrb[0].mxu1 %v142_v9 }
 0x1fe   :  { %v234_v23 = vpop.f32.mrb[0].mxu1 }
 0x1ff   :  { %v235_v24 = vadd.f32 %v356_v22, %v234_v23  ;;  %v479_v25 = vpop.f32.mrb[1].mxu1 }
 0x201   :  { %597 = vtanh.f32 %v235_v24  ;;  %v239_v26 = vmax.f32 %v235_v24, 0.0 }
 0x20b   :  { %v598_v27 = vpop.eup %597 }
 0x20c   :  { %v240_v28 = vsel %vm762_vm3, %v598_v27, %v239_v26 }
 0x20d   :  { %513 = vmatmul.mubr.f32.vlgmr.msra.gmra.mrb[2].mxu0 %v240_v28 }
 0x2e0   :  { %v332_v0 = vpop.f32.mrb[2].mxu0 }
 0x2e1   :  { %v333_v30 = vadd.f32 %v358_v29, %v332_v0  ;;  %v514_v31 = vpop.f32.mrb[3].mxu0 }
 0x2e3   :  { %599 = vtanh.f32 %v333_v30 }
 0x2ed   :  { %v600_v32 = vpop.eup %599 }
 0x2ee   :  { %337 = vst [vmem:[#allocation7] sm:$0xff] %v600_v32 }
 0x2ef   :  { %656 = shalt.err (!%p653_p6)
}
 0x2f0   :  { %s657_s2 = scalar_lea.hbm %s794_s3, 128 }
 0x2f1   :  { %p658_p7 = scmp.ne.s32.totalorder %s794_s3, %s657_s2  ;;  %p661_p8 = scmp.lt.u32.totalorder %s657_s2, %s794_s3 }
 0x2f3   :  { %p663_p9 = pnand %p661_p8, %p658_p7 }
 0x2f5   :  { %666 = shalt.err (!%p663_p9)
}
 0x2f6   :  { %347 = dma.vmem_to_hbm [thread:$0]  %s345_s16, 128, %s794_s3, [#allocation4]  }
 0x2f7   :  { %671 = dma.done.wait [#allocation4], 128  }
 0x2f8   :  { %672 = vsyncadd [#allocation4], 4294967168 }
 0x2f9   :  { %351 = vsyncpa [#allocation3], 1 }
 0x2fa   :  { %352 = vsyncpa [#allocation6], 1 }
 0x2fb   :  { %353 = vsyncpa [#allocation4], 1 }

</bundles_post_ra>
